<compile_context>
chip_gen: v6e
topology: v6e:2x2x1
jax: 0.10.0
libtpu: 0.0.40
codegen_flags: <defaults>
</compile_context>

<pallas_src>
import jax
import jax.numpy as jnp
from jax.experimental import pallas as pl
from jax.experimental.pallas import tpu as pltpu


def _round_up(a, m):
    return ((a + m - 1) // m) * m


def _vmem_limit_bytes():
    """~75% of per-core VMEM: leaves headroom for Mosaic internal scratch (critical on v7x)."""
    try:
        cap = int(pltpu.get_tpu_info().vmem_capacity_bytes)
    except Exception:
        cap = 64 << 20  # conservative fallback: v7x per-TensorCore capacity
    return max(16 << 20, int(cap * 0.75))


def _classifier_kernel(x_ref, w_ref, b_ref, o_ref, acc_ref):
    # x_ref:   (TB, KB)     input dtype (bf16/f32) -- a direct view of the NCHW tensor
    # w_ref:   (KB, N_pad)  f32, HW-replicated and pre-scaled by 1/HW (pool folded in)
    # b_ref:   (1,  N_pad)  f32
    # o_ref:   (TB, N_pad)  f32
    # acc_ref: (TB, N_pad)  f32 scratch accumulator (reduction over the K grid axis)
    k = pl.program_id(1)

    @pl.when(k == 0)
    def _():
        acc_ref[...] = jnp.zeros_like(acc_ref)

    acc_ref[...] += jnp.dot(
        x_ref[...].astype(jnp.float32), w_ref[...],
        preferred_element_type=jnp.float32)

    @pl.when(k == pl.num_programs(1) - 1)
    def _():
        o_ref[...] = (acc_ref[...] + b_ref[...]).astype(o_ref.dtype)


def prepare_classifier_params(weight, bias, *, hw=49):
    """Hoisted (one-time) parameter preparation for the fused pool+linear GEMM.

    weight: (num_classes, C) torch Linear layout; bias: (num_classes,).
    Returns:
      w_rep: (C*hw, N_pad) f32 -- weight.T scaled by 1/hw, each row replicated hw
             times (row c*hw + j == weight[:, c]/hw), zero-padded to N_pad lanes.
      b_pad: (1, N_pad) f32.
    The 1/hw fold stays in f32 (do not downcast the pre-scaled weight).
    """
    num_classes, c = weight.shape
    n_pad = _round_up(num_classes, 128)
    w_t = weight.T.astype(jnp.float32) * (1.0 / hw)            # (C, num_classes)
    w_rep = jnp.repeat(w_t, hw, axis=0)                        # (C*hw, num_classes)
    w_rep = jnp.pad(w_rep, ((0, 0), (0, n_pad - num_classes)))
    b_pad = jnp.pad(bias.astype(jnp.float32), (0, n_pad - num_classes)).reshape(1, n_pad)
    return w_rep, b_pad


def classifier_forward(x_nchw, w_rep, b_pad, num_classes):
    """x_nchw: (B, C, 7, 7) any float dtype (bf16 recommended); params from
    prepare_classifier_params. Returns (B, num_classes) f32."""
    b, c, h, w = x_nchw.shape
    assert (h, w) == (7, 7), "AvgPool2d((7,7)) with padding 0 expects 7x7 spatial input"
    hw = h * w
    k_total = c * hw
    n_pad = w_rep.shape[1]
    assert w_rep.shape == (k_total, n_pad) and n_pad % 128 == 0
    itemsize = jnp.dtype(x_nchw.dtype).itemsize

    # Zero-copy view: the pool is folded into the GEMM via the HW-replicated weight,
    # so the kernel reads the original NCHW tensor directly (no transpose pass in HBM).
    x_flat = x_nchw.reshape(b, k_total)

    vmem_limit = _vmem_limit_bytes()

    # --- K (reduction) tiling: keep the resident replicated-weight block bounded ----
    # Single K block whenever the (double-buffered) weight fits comfortably; only tile
    # K when C is a multiple of 128 (the (8,128) lane rule requires the K block to be a
    # multiple of 128 when it is not the full K, and 49 is coprime with 128).
    w_full_bytes = 2 * k_total * n_pad * 4
    if w_full_bytes <= vmem_limit // 3 or c % 128 != 0:
        kb, nk = k_total, 1                      # weight stays resident (constant index)
    else:
        ck = 128
        while (c % (ck * 2) == 0) and (2 * (ck * 2) * hw * n_pad * 4 <= vmem_limit // 3):
            ck *= 2
        kb, nk = ck * hw, c // ck
    w_bytes = 2 * kb * n_pad * 4                 # pipeline double-buffers the weight block
    # TODO(synk): weight/bias index_maps are constant when nk == 1; single-buffering them
    # (pipeline_mode=pl.Buffered(1)) would free one weight-sized VMEM buffer for a larger tb.

    # --- batch tiling: size tb from the remaining VMEM budget -----------------------
    per_row = 2 * kb * itemsize + 3 * n_pad * 4  # x (x2 buffers), out (x2), acc (x1)
    tb_budget = max(8, int((vmem_limit - w_bytes - 2 * n_pad * 4) * 0.8) // per_row)
    if b <= 8:
        tb = b                                   # tiny batch: one full-batch block
    else:
        tb = min(tb_budget, 256, b)              # 256 fills the v6e/v7x MXU M dimension
        tb = max(8, (tb // 8) * 8)
        # Megacore (v7x): make sure the "parallel" batch axis has >= 2 grid steps.
        tb = min(tb, _round_up(pl.cdiv(b, 2), 8))
    nb = pl.cdiv(b, tb)

    cost = pl.CostEstimate(
        flops=2 * b * k_total * num_classes,
        transcendentals=0,
        bytes_accessed=(b * k_total * itemsize        # x read once, no transpose pass
                        + k_total * n_pad * 4         # replicated weight
                        + n_pad * 4                   # bias
                        + b * n_pad * 4),             # output
    )

    out_padded = pl.pallas_call(
        _classifier_kernel,
        out_shape=jax.ShapeDtypeStruct((b, n_pad), jnp.float32),
        grid_spec=pltpu.PrefetchScalarGridSpec(
            num_scalar_prefetch=0,
            grid=(nb, nk),                                        # reduction axis last
            in_specs=[
                pl.BlockSpec((tb, kb), lambda i, k: (i, k)),      # batch/K-tiled x view
                pl.BlockSpec((kb, n_pad), lambda i, k: (k, 0)),   # replicated weight
                pl.BlockSpec((1, n_pad), lambda i, k: (0, 0)),    # resident bias
            ],
            out_specs=pl.BlockSpec((tb, n_pad), lambda i, k: (i, 0)),
            scratch_shapes=[pltpu.VMEM((tb, n_pad), jnp.float32)],
        ),
        compiler_params=pltpu.CompilerParams(
            dimension_semantics=("parallel", "arbitrary"),
            vmem_limit_bytes=vmem_limit,
        ),
        cost_estimate=cost,
    )(x_flat, w_rep, b_pad)

    # Strip the lane padding; output is (B, num_classes), matching torch's view(B, -1).
    # TODO(synk): torch's .squeeze() would also drop the batch dim when B == 1; we
    # intentionally always return (B, num_classes).
    return out_padded[:, :num_classes]


def _reference_forward(x_nchw, weight, bias):
    b, c, h, w = x_nchw.shape
    x32 = x_nchw.astype(jnp.float32)
    pooled = jnp.mean(x32.reshape(b, c, h * w), axis=-1)        # AvgPool2d((7,7)) + squeeze
    return pooled @ weight.T.astype(jnp.float32) + bias.astype(jnp.float32)


if __name__ == "__main__":
    # Small shapes consistent with the module: spatial must be 7x7 for the pool.
    batch = 2
    in_channels = 32
    num_classes = 10

    key = jax.random.PRNGKey(0)
    kx, kw, kb = jax.random.split(key, 3)

    # bf16 activations: halves HBM bytes of the dominant tensor (kernel is HBM-bound);
    # the kernel accumulates in f32.
    x = jax.random.normal(kx, (batch, in_channels, 7, 7), dtype=jnp.float32).astype(jnp.bfloat16)
    # Deterministic "Linear" params (torch layout: weight (out, in), bias (out,))
    weight = jax.random.normal(kw, (num_classes, in_channels), dtype=jnp.float32) * 0.02
    bias = jax.random.normal(kb, (num_classes,), dtype=jnp.float32) * 0.01

    # Hoisted, one-time parameter prep (kept out of the per-call path).
    w_rep, b_pad = prepare_classifier_params(weight, bias, hw=49)

    out = classifier_forward(x, w_rep, b_pad, num_classes)
    out = jax.block_until_ready(out)

    ref = _reference_forward(x, weight, bias)
    assert out.shape == (batch, num_classes), out.shape
    assert jnp.allclose(out, ref, atol=2e-3, rtol=2e-3), "mismatch vs reference"

    print("KERNEL_OK")
</pallas_src>

<mosaic_0001>
module attributes {stable_mosaic.version = 11 : i64} {
  func.func @_classifier_kernel(%arg0: i32, %arg1: i32, %arg2: memref<2x1568xbf16, #tpu.memory_space<vmem>>, %arg3: memref<1568x128xf32, #tpu.memory_space<vmem>>, %arg4: memref<1x128xf32, #tpu.memory_space<vmem>>, %arg5: memref<2x128xf32, #tpu.memory_space<vmem>>, %arg6: memref<2x128xf32, #tpu.memory_space<vmem>>) attributes {dimension_semantics = [#tpu.dimension_semantics<parallel>, #tpu.dimension_semantics<arbitrary>], iteration_bounds = array<i64: 1, 1>, scalar_prefetch = 0 : i64, scratch_operands = 1 : i64, tpu.core_type = #tpu.core_type<tc>, window_params = [{transform_indices = @transform_0, window_bounds = array<i64: 2, 1568>}, {transform_indices = @transform_1, window_bounds = array<i64: 1568, 128>}, {pipeline_mode = #tpu.pipeline_mode<synchronous>, transform_indices = @transform_2, window_bounds = array<i64: 1, 128>}, {transform_indices = @transform_3, window_bounds = array<i64: 2, 128>}]} {
    %c0_i32 = arith.constant 0 : i32
    %0 = arith.cmpi eq, %arg1, %c0_i32 : i32
    %1 = arith.extui %0 : i1 to i32
    %c0_i32_0 = arith.constant 0 : i32
    %2 = arith.cmpi ne, %1, %c0_i32_0 : i32
    scf.if %2 {
      %cst_10 = arith.constant 0.000000e+00 : f32
      %13 = vector.broadcast %cst_10 : f32 to vector<2x128xf32>
      %c0_11 = arith.constant 0 : index
      %c0_12 = arith.constant 0 : index
      %14 = vector.load %arg6[%c0_11, %c0_12] : memref<2x128xf32, #tpu.memory_space<vmem>>, vector<2x128xf32>
      tpu.vector_store %arg6[%c0_11, %c0_12], %13 {strides = array<i32>} : memref<2x128xf32, #tpu.memory_space<vmem>>, vector<2x128xf32>,
    } else {
    }
    %c0 = arith.constant 0 : index
    %c0_1 = arith.constant 0 : index
    %3 = vector.load %arg6[%c0, %c0_1] : memref<2x128xf32, #tpu.memory_space<vmem>>, vector<2x128xf32>
    %c0_2 = arith.constant 0 : index
    %c0_3 = arith.constant 0 : index
    %4 = vector.load %arg2[%c0_2, %c0_3] : memref<2x1568xbf16, #tpu.memory_space<vmem>>, vector<2x1568xbf16>
    %5 = arith.extf %4 : vector<2x1568xbf16> to vector<2x1568xf32>
    %c0_4 = arith.constant 0 : index
    %c0_5 = arith.constant 0 : index
    %6 = vector.load %arg3[%c0_4, %c0_5] : memref<1568x128xf32, #tpu.memory_space<vmem>>, vector<1568x128xf32>
    %cst = arith.constant dense<0.000000e+00> : vector<2x128xf32>
    %7 = tpu.matmul %5, %6, %cst {dimension_numbers = #tpu.dot_dimension_numbers<[1], [0], [0], [1], [0, 0, 1, 1], [], []>} : vector<2x1568xf32>, vector<1568x128xf32>, vector<2x128xf32> -> vector<2x128xf32>
    %8 = arith.addf %3, %7 : vector<2x128xf32>
    %c0_6 = arith.constant 0 : index
    %c0_7 = arith.constant 0 : index
    %9 = vector.load %arg6[%c0_6, %c0_7] : memref<2x128xf32, #tpu.memory_space<vmem>>, vector<2x128xf32>
    tpu.vector_store %arg6[%c0_6, %c0_7], %8 {strides = array<i32>} : memref<2x128xf32, #tpu.memory_space<vmem>>, vector<2x128xf32>,
    %c0_i32_8 = arith.constant 0 : i32
    %10 = arith.cmpi eq, %arg1, %c0_i32_8 : i32
    %11 = arith.extui %10 : i1 to i32
    %c0_i32_9 = arith.constant 0 : i32
    %12 = arith.cmpi ne, %11, %c0_i32_9 : i32
    scf.if %12 {
      %c0_10 = arith.constant 0 : index
      %c0_11 = arith.constant 0 : index
      %13 = vector.load %arg6[%c0_10, %c0_11] : memref<2x128xf32, #tpu.memory_space<vmem>>, vector<2x128xf32>
      %c0_12 = arith.constant 0 : index
      %c0_13 = arith.constant 0 : index
      %14 = vector.load %arg4[%c0_12, %c0_13] : memref<1x128xf32, #tpu.memory_space<vmem>>, vector<1x128xf32>
      %15 = vector.broadcast %14 : vector<1x128xf32> to vector<2x128xf32>
      %16 = arith.addf %13, %15 : vector<2x128xf32>
      %c0_14 = arith.constant 0 : index
      %c0_15 = arith.constant 0 : index
      %17 = vector.load %arg5[%c0_14, %c0_15] : memref<2x128xf32, #tpu.memory_space<vmem>>, vector<2x128xf32>
      tpu.vector_store %arg5[%c0_14, %c0_15], %16 {strides = array<i32>} : memref<2x128xf32, #tpu.memory_space<vmem>>, vector<2x128xf32>,
    } else {
    }
    return
  }
  func.func @transform_0(%arg0: i32, %arg1: i32) -> (i32, i32) {
    %c0_i32 = arith.constant 0 : i32
    return %arg0, %arg1 : i32, i32
  }
  func.func @transform_1(%arg0: i32, %arg1: i32) -> (i32, i32) {
    %c0_i32 = arith.constant 0 : i32
    %c0_i32_0 = arith.constant 0 : i32
    return %arg1, %c0_i32 : i32, i32
  }
  func.func @transform_2(%arg0: i32, %arg1: i32) -> (i32, i32) {
    %c0_i32 = arith.constant 0 : i32
    %c0_i32_0 = arith.constant 0 : i32
    %c0_i32_1 = arith.constant 0 : i32
    return %c0_i32, %c0_i32_0 : i32, i32
  }
  func.func @transform_3(%arg0: i32, %arg1: i32) -> (i32, i32) {
    %c0_i32 = arith.constant 0 : i32
    %c0_i32_0 = arith.constant 0 : i32
    return %arg0, %c0_i32 : i32, i32
  }
}

</mosaic_0001>

<bundles_post_ra>
// kernel: tpu_custom_call.1
= control target key start
LH: loop header
LB: loop body
LE: loop exit
PB: predicated region body
PF: predicated region fallthrough
CT: control target
= control target key end

     0   :  { %8 = vsyncpa [#allocation4], 0  ;;  %s1212_s0 = inlined_call_operand.hbm [shape: bf16[2,1568], index: 0, kind: input, shape index: {}]   ;;  %s1213_s1 = inlined_call_operand.hbm [shape: f32[1568,128], index: 1, kind: input, shape index: {}]   ;;  %s1214_s2 = inlined_call_operand.vmem [shape: f32[1,128], index: 2, kind: input, shape index: {}]   ;;  %s1215_s3 = inlined_call_operand.hbm [shape: f32[2,128], index: 3, kind: output, shape index: {}]  }
   0x1   :  { %9 = vsyncpa [#allocation7], 0 }
   0x2   :  { %10 = vsyncpa [#allocation5], 0  ;;  %s1149_s12 = smov [#allocation3]   ;;  %s1150_s14 = smov [#allocation6]  }
   0x3   :  { %s17_s13 = sshll.u32 %s1149_s12, 4  ;;  %s26_s15 = sshll.u32 %s1150_s14, 4  ;;  %s18_s13 = int_to_ptr.vmem [resolvable:$true] %s17_s13  ;;  %s27_s15 = int_to_ptr.vmem [resolvable:$true] %s26_s15 }
   0x4   :  { %s1091_s16 = scalar_lea.vmem %s18_s13, 208  ;;  %s1095_s17 = scalar_lea.vmem %s18_s13, 224 }
   0x5   :  { %p1092_p0 = scmp.ne.s32.totalorder %s18_s13, %s1091_s16  ;;  %p1096_p1 = scmp.lt.s32.totalorder %s18_s13, %s18_s13 }
   0x6   :  { %p1097_p2 = scmp.lt.s32.totalorder %s1095_s17, %s1091_s16 }
   0x8   :  { %p1098_p3 = por %p1097_p2, %p1096_p1 }
   0xa   :  { %p1099_p4 = pnand %p1098_p3, %p1092_p0 }
   0xc   :  { %1102 = shalt.err (!%p1099_p4)
}
   0xd   :  { %20 = dma.hbm_to_vmem [thread:$0]  %s1212_s0, 208, %s18_s13, [#allocation4]  }
   0xe   :  { %s1111_s20 = scalar_lea.vmem %s27_s15, 25088  ;;  %p1116_p6 = scmp.lt.s32.totalorder %s27_s15, %s27_s15 }
   0xf   :  { %p1112_p5 = scmp.ne.s32.totalorder %s27_s15, %s1111_s20  ;;  %p1117_p7 = scmp.lt.s32.totalorder %s1111_s20, %s1111_s20 }
  0x11   :  { %p1118_p8 = por %p1117_p7, %p1116_p6 }
  0x13   :  { %p1119_p9 = pnand %p1118_p8, %p1112_p5 }
  0x15   :  { %1122 = shalt.err (!%p1119_p9)
}
  0x16   :  { %s1151_s21 = smov 128   ;;  %s1152_s22 = smov 8  }
  0x17   :  { %32 = dma.hbm_to_vmem [thread:$0]  %s1213_s1, 25088, %s27_s15, [#allocation7], %s1151_s21, %s1151_s21, %s1152_s22  }
  0x18   :  { %1143 = dma.done.wait [#allocation4], 208  }
  0x19   :  { %1144 = vsyncadd [#allocation4], 4294967088 }
  0x1a   :  { %1145 = dma.done.wait [#allocation7], 25088  }
  0x1b   :  { %1146 = vsyncadd [#allocation7], 4294942208  ;;  %v1153_v0 = vmov 0.0   ;;  %v84_v1 = vld [vmem:[#allocation6 + $0xf8] sm:$0xff]  ;;  %v83_v5 = vld [vmem:[#allocation6 + $0xf0] sm:$0xff]  ;;  %v257_v33 = vlaneseq  ;;  %vm1155_vm0 = vmmov 0  }
  0x1c   :  { %45 = vst [vmem:[#allocation2] sm:$0x3] %v1153_v0  ;;  %v116_v2 = vld [vmem:[#allocation6 + $0x1f8] sm:$0xff]  ;;  %849 = vmatprep.subr.mxu0 %v84_v1  ;;  %v115_v6 = vld [vmem:[#allocation6 + $0x1f0] sm:$0xff]  ;;  %v82_v9 = vld [vmem:[#allocation6 + $0xe8] sm:$0xff]  ;;  %vm323_vm1 = vcmask 261120  }
  0x1d   :  { %v68_v3 = vld [vmem:[#allocation6 + $0x78] sm:$0xff]  ;;  %884 = vmatprep.subr.mxu1 %v116_v2  ;;  %v67_v7 = vld [vmem:[#allocation6 + $0x70] sm:$0xff]  ;;  %v114_v10 = vld [vmem:[#allocation6 + $0x1e8] sm:$0xff]  ;;  %v1154_v31 = vmov 1983009808   ;;  %v258_v43 = vshrl.u32 %v257_v33, 7 }
  0x1e   :  { %v100_v4 = vld [vmem:[#allocation6 + $0x178] sm:$0xff]  ;;  %850 = vmatpush3.msra.mxu0 %v68_v3  ;;  %v99_v8 = vld [vmem:[#allocation6 + $0x170] sm:$0xff]  ;;  %v66_v11 = vld [vmem:[#allocation6 + $0x68] sm:$0xff]  ;;  %v255_v32 = vunpack.c.l.s4 %v1154_v31  ;;  %s1156_s25 = smov [#allocation8]  }
  0x1f   :  { %885 = vmatpush3.msra.mxu1 %v100_v4  ;;  %851 = vmatprep.subr.mxu0 %v83_v5  ;;  %v98_v12 = vld [vmem:[#allocation6 + $0x168] sm:$0xff]  ;;  %v81_v13 = vld [vmem:[#allocation6 + $0xe0] sm:$0xff]  ;;  %v80_v17 = vld [vmem:[#allocation6 + $0xd8] sm:$0xff]  ;;  %s837_s26 = sshll.u32 %s1156_s25, 4  ;;  %s838_s26 = int_to_ptr.vmem [resolvable:$true] %s837_s26 }
  0x20   :  { %886 = vmatprep.subr.mxu1 %v115_v6  ;;  %852 = vmatpush3.msra.mxu0 %v67_v7  ;;  %v113_v14 = vld [vmem:[#allocation6 + $0x1e0] sm:$0xff]  ;;  %v112_v18 = vld [vmem:[#allocation6 + $0x1d8] sm:$0xff]  ;;  %v79_v21 = vld [vmem:[#allocation6 + $0xd0] sm:$0xff]  ;;  %v256_v42 = vunpack.c.0.s8 %v255_v32  ;;  %s1123_s27 = scalar_lea.vmem %s838_s26, 32  ;;  %p1128_p11 = scmp.lt.s32.totalorder %s838_s26, %s838_s26 }
  0x21   :  { %887 = vmatpush3.msra.mxu1 %v99_v8  ;;  %853 = vmatprep.subr.mxu0 %v82_v9  ;;  %v65_v15 = vld [vmem:[#allocation6 + $0x60] sm:$0xff]  ;;  %v64_v19 = vld [vmem:[#allocation6 + $0x58] sm:$0xff]  ;;  %v111_v22 = vld [vmem:[#allocation6 + $0x1d0] sm:$0xff]  ;;  %p1124_p10 = scmp.ne.s32.totalorder %s838_s26, %s1123_s27  ;;  %p1129_p12 = scmp.lt.s32.totalorder %s1123_s27, %s1123_s27 }
  0x22   :  { %888 = vmatprep.subr.mxu1 %v114_v10  ;;  %v97_v16 = vld [vmem:[#allocation6 + $0x160] sm:$0xff]  ;;  %854 = vmatpush3.msra.mxu0 %v66_v11  ;;  %v96_v20 = vld [vmem:[#allocation6 + $0x158] sm:$0xff]  ;;  %v63_v23 = vld [vmem:[#allocation6 + $0x50] sm:$0xff]  ;;  %v1184_v52 = vsub.s32 %v256_v42, %v258_v43 }
  0x23   :  { %889 = vmatpush3.msra.mxu1 %v98_v12  ;;  %855 = vmatprep.subr.mxu0 %v81_v13  ;;  %v95_v24 = vld [vmem:[#allocation6 + $0x150] sm:$0xff]  ;;  %v78_v25 = vld [vmem:[#allocation6 + $0xc8] sm:$0xff]  ;;  %v77_v29 = vld [vmem:[#allocation6 + $0xc0] sm:$0xff]  ;;  %p1130_p13 = por %p1129_p12, %p1128_p11 }
  0x24   :  { %890 = vmatprep.subr.mxu1 %v113_v14  ;;  %856 = vmatpush3.msra.mxu0 %v65_v15  ;;  %v110_v26 = vld [vmem:[#allocation6 + $0x1c8] sm:$0xff]  ;;  %v109_v30 = vld [vmem:[#allocation6 + $0x1c0] sm:$0xff]  ;;  %v76_v36 = vld [vmem:[#allocation6 + $0xb8] sm:$0xff] }
  0x25   :  { %891 = vmatpush3.msra.mxu1 %v97_v16  ;;  %857 = vmatprep.subr.mxu0 %v80_v17  ;;  %v62_v27 = vld [vmem:[#allocation6 + $0x48] sm:$0xff]  ;;  %v61_v34 = vld [vmem:[#allocation6 + $0x40] sm:$0xff]  ;;  %v108_v37 = vld [vmem:[#allocation6 + $0x1b8] sm:$0xff]  ;;  %p1131_p0 = pnand %p1130_p13, %p1124_p10 }
  0x26   :  { %892 = vmatprep.subr.mxu1 %v112_v18  ;;  %858 = vmatpush3.msra.mxu0 %v64_v19  ;;  %v94_v28 = vld [vmem:[#allocation6 + $0x148] sm:$0xff]  ;;  %v93_v35 = vld [vmem:[#allocation6 + $0x140] sm:$0xff]  ;;  %v60_v38 = vld [vmem:[#allocation6 + $0x38] sm:$0xff] }
  0x27   :  { %893 = vmatpush3.msra.mxu1 %v96_v20  ;;  %859 = vmatprep.subr.mxu0 %v79_v21  ;;  %v92_v39 = vld [vmem:[#allocation6 + $0x138] sm:$0xff]  ;;  %v75_v40 = vld [vmem:[#allocation6 + $0xb0] sm:$0xff]  ;;  %v74_v46 = vld [vmem:[#allocation6 + $0xa8] sm:$0xff] }
  0x28   :  { %894 = vmatprep.subr.mxu1 %v111_v22  ;;  %860 = vmatpush3.msra.mxu0 %v63_v23  ;;  %v107_v41 = vld [vmem:[#allocation6 + $0x1b0] sm:$0xff]  ;;  %v106_v47 = vld [vmem:[#allocation6 + $0x1a8] sm:$0xff]  ;;  %v73_v50 = vld [vmem:[#allocation6 + $0xa0] sm:$0xff] }
  0x29   :  { %895 = vmatpush3.msra.mxu1 %v95_v24  ;;  %861 = vmatprep.subr.mxu0 %v78_v25  ;;  %v59_v44 = vld [vmem:[#allocation6 + $0x30] sm:$0xff]  ;;  %v58_v48 = vld [vmem:[#allocation6 + $0x28] sm:$0xff]  ;;  %v105_v51 = vld [vmem:[#allocation6 + $0x1a0] sm:$0xff] }
  0x2a   :  { %896 = vmatprep.subr.mxu1 %v110_v26  ;;  %862 = vmatpush3.msra.mxu0 %v62_v27  ;;  %v91_v45 = vld [vmem:[#allocation6 + $0x130] sm:$0xff]  ;;  %v90_v49 = vld [vmem:[#allocation6 + $0x128] sm:$0xff]  ;;  %v57_v53 = vld [vmem:[#allocation6 + $0x20] sm:$0xff] }
  0x2b   :  { %897 = vmatpush3.msra.mxu1 %v94_v28  ;;  %863 = vmatprep.subr.mxu0 %v77_v29  ;;  %v89_v54 = vld [vmem:[#allocation6 + $0x120] sm:$0xff]  ;;  %v1186_v55 = vld [vmem:[#allocation3] sm:$0xff]  ;;  %v70_v4 = vld [vmem:[#allocation6 + $0x88] sm:$0xff] }
  0x2c   :  { %898 = vmatprep.subr.mxu1 %v109_v30  ;;  %864 = vmatpush3.msra.mxu0 %v61_v34  ;;  %v72_v56 = vld [vmem:[#allocation6 + $0x98] sm:$0xff]  ;;  %v49_v58 = vunpack.c.l.bf16 %v1186_v55  ;;  %v71_v61 = vld [vmem:[#allocation6 + $0x90] sm:$0xff]  ;;  %v102_v5 = vld [vmem:[#allocation6 + $0x188] sm:$0xff] }
  0x2d   :  { %899 = vmatpush3.msra.mxu1 %v93_v35  ;;  %865 = vmatprep.subr.mxu0 %v76_v36  ;;  %v104_v57 = vld [vmem:[#allocation6 + $0x198] sm:$0xff]  ;;  %v103_v62 = vld [vmem:[#allocation6 + $0x190] sm:$0xff]  ;;  %v54_v7 = vld [vmem:[#allocation6 + $0x8] sm:$0xff] }
  0x2e   :  { %900 = vmatprep.subr.mxu1 %v108_v37  ;;  %866 = vmatpush3.msra.mxu0 %v60_v38  ;;  %v56_v59 = vld [vmem:[#allocation6 + $0x18] sm:$0xff]  ;;  %v260_v63 = vrot.slane %v49_v58, %v1184_v52  ;;  %v253_v1 = vcombine.high %v49_v58, %v49_v58  ;;  %v55_v2 = vld [vmem:[#allocation6 + $0x10] sm:$0xff]  ;;  %v86_v8 = vld [vmem:[#allocation6 + $0x108] sm:$0xff] }
  0x2f   :  { %901 = vmatpush3.msra.mxu1 %v92_v39  ;;  %867 = vmatprep.subr.mxu0 %v75_v40  ;;  %v88_v60 = vld [vmem:[#allocation6 + $0x118] sm:$0xff]  ;;  %v87_v3 = vld [vmem:[#allocation6 + $0x110] sm:$0xff]  ;;  %v69_v9 = vld [vmem:[#allocation6 + $0x80] sm:$0xff] }
  0x30   :  { %902 = vmatprep.subr.mxu1 %v107_v41  ;;  %868 = vmatpush3.msra.mxu0 %v59_v44  ;;  %v267_v6 = vrot.slane %v253_v1, %v1184_v52  ;;  %v101_v10 = vld [vmem:[#allocation6 + $0x180] sm:$0xff]  ;;  %v268_v11 = vcombine.high %v260_v63, %v260_v63  ;;  %v148_v15 = vld [vmem:[#allocation6 + $0x2f8] sm:$0xff]  ;;  %v147_v19 = vld [vmem:[#allocation6 + $0x2f0] sm:$0xff] }
  0x31   :  { %903 = vmatpush3.msra.mxu1 %v91_v45  ;;  %869 = vmatprep.subr.mxu0 %v74_v46  ;;  %v53_v12 = vld [vmem:[#allocation6] sm:$0xff]  ;;  %v180_v16 = vld [vmem:[#allocation6 + $0x3f8] sm:$0xff]  ;;  %v179_v20 = vld [vmem:[#allocation6 + $0x3f0] sm:$0xff] }
  0x32   :  { %904 = vmatprep.subr.mxu1 %v106_v47  ;;  %870 = vmatpush3.msra.mxu0 %v58_v48  ;;  %v269_v13 = vcombine.high %v267_v6, %v267_v6  ;;  %v85_v14 = vld [vmem:[#allocation6 + $0x100] sm:$0xff]  ;;  %v132_v17 = vld [vmem:[#allocation6 + $0x278] sm:$0xff]  ;;  %v131_v21 = vld [vmem:[#allocation6 + $0x270] sm:$0xff] }
  0x33   :  { %905 = vmatpush3.msra.mxu1 %v90_v49  ;;  %871 = vmatprep.subr.mxu0 %v73_v50  ;;  %v164_v18 = vld [vmem:[#allocation6 + $0x378] sm:$0xff]  ;;  %v163_v22 = vld [vmem:[#allocation6 + $0x370] sm:$0xff]  ;;  %v146_v23 = vld [vmem:[#allocation6 + $0x2e8] sm:$0xff] }
  0x34   :  { %906 = vmatprep.subr.mxu1 %v105_v51  ;;  %872 = vmatpush3.msra.mxu0 %v57_v53  ;;  %v178_v24 = vld [vmem:[#allocation6 + $0x3e8] sm:$0xff]  ;;  %v145_v27 = vld [vmem:[#allocation6 + $0x2e0] sm:$0xff]  ;;  %v144_v31 = vld [vmem:[#allocation6 + $0x2d8] sm:$0xff] }
  0x35   :  { %907 = vmatpush3.msra.mxu1 %v89_v54  ;;  %873 = vmatprep.subr.mxu0 %v72_v56  ;;  %v130_v25 = vld [vmem:[#allocation6 + $0x268] sm:$0xff]  ;;  %v177_v28 = vld [vmem:[#allocation6 + $0x3e0] sm:$0xff]  ;;  %v176_v32 = vld [vmem:[#allocation6 + $0x3d8] sm:$0xff] }
  0x36   :  { %908 = vmatprep.subr.mxu1 %v104_v57  ;;  %874 = vmatpush3.msra.mxu0 %v56_v59  ;;  %v162_v26 = vld [vmem:[#allocation6 + $0x368] sm:$0xff]  ;;  %v129_v29 = vld [vmem:[#allocation6 + $0x260] sm:$0xff]  ;;  %v128_v33 = vld [vmem:[#allocation6 + $0x258] sm:$0xff]  ;;  %v50_v57 = vunpack.c.h.bf16 %v1186_v55 }
  0x37   :  { %909 = vmatpush3.msra.mxu1 %v88_v60  ;;  %875 = vmatprep.subr.mxu0 %v71_v61  ;;  %v161_v30 = vld [vmem:[#allocation6 + $0x360] sm:$0xff]  ;;  %v160_v34 = vld [vmem:[#allocation6 + $0x358] sm:$0xff]  ;;  %v143_v35 = vld [vmem:[#allocation6 + $0x2d0] sm:$0xff] }
  0x38   :  { %910 = vmatprep.subr.mxu1 %v103_v62  ;;  %876 = vmatpush3.msra.mxu0 %v55_v2  ;;  %v175_v36 = vld [vmem:[#allocation6 + $0x3d0] sm:$0xff]  ;;  %v142_v39 = vld [vmem:[#allocation6 + $0x2c8] sm:$0xff]  ;;  %v141_v43 = vld [vmem:[#allocation6 + $0x2c0] sm:$0xff] }
  0x39   :  { %911 = vmatpush3.msra.mxu1 %v87_v3  ;;  %877 = vmatprep.subr.mxu0 %v70_v4  ;;  %v127_v37 = vld [vmem:[#allocation6 + $0x250] sm:$0xff]  ;;  %v174_v40 = vld [vmem:[#allocation6 + $0x3c8] sm:$0xff]  ;;  %v173_v44 = vld [vmem:[#allocation6 + $0x3c0] sm:$0xff]  ;;  %v270_v4 = vcombine.high %v50_v57, %v50_v57 }
  0x3a   :  { %912 = vmatprep.subr.mxu1 %v102_v5  ;;  %878 = vmatpush3.msra.mxu0 %v54_v7  ;;  %v159_v38 = vld [vmem:[#allocation6 + $0x350] sm:$0xff]  ;;  %v126_v41 = vld [vmem:[#allocation6 + $0x248] sm:$0xff]  ;;  %v125_v45 = vld [vmem:[#allocation6 + $0x240] sm:$0xff] }
  0x3b   :  { %913 = vmatpush3.msra.mxu1 %v86_v8  ;;  %879 = vmatprep.subr.mxu0 %v69_v9  ;;  %v158_v42 = vld [vmem:[#allocation6 + $0x348] sm:$0xff]  ;;  %v157_v46 = vld [vmem:[#allocation6 + $0x340] sm:$0xff]  ;;  %v140_v47 = vld [vmem:[#allocation6 + $0x2b8] sm:$0xff]  ;;  %v277_v9 = vrot.slane %v50_v57, %v1184_v52 }
  0x3c   :  { %914 = vmatprep.subr.mxu1 %v101_v10  ;;  %880 = vmatpush3.msra.mxu0 %v53_v12  ;;  %v172_v48 = vld [vmem:[#allocation6 + $0x3b8] sm:$0xff]  ;;  %v139_v51 = vld [vmem:[#allocation6 + $0x2b0] sm:$0xff]  ;;  %v138_v58 = vld [vmem:[#allocation6 + $0x2a8] sm:$0xff] }
  0x3d   :  { %390 = vmatprep.mubr.f32.mxu0 %v268_v11  ;;  %915 = vmatpush3.msra.mxu1 %v85_v14  ;;  %v124_v49 = vld [vmem:[#allocation6 + $0x238] sm:$0xff]  ;;  %v171_v53 = vld [vmem:[#allocation6 + $0x3b0] sm:$0xff]  ;;  %v170_v59 = vld [vmem:[#allocation6 + $0x3a8] sm:$0xff]  ;;  %v284_v14 = vrot.slane %v270_v4, %v1184_v52 }
  0x3e   :  { %460 = vmatprep.mubr.f32.mxu1 %v269_v13  ;;  %391 = vmatmul.mubr.f32.vlgmr.msra.gmra.mxu0 %v260_v63  ;;  %v156_v50 = vld [vmem:[#allocation6 + $0x338] sm:$0xff]  ;;  %v123_v54 = vld [vmem:[#allocation6 + $0x230] sm:$0xff]  ;;  %v122_v60 = vld [vmem:[#allocation6 + $0x228] sm:$0xff] }
  0x3f   :  { %461 = vmatmul.mubr.f32.vlgmr.msra.gmra.mxu1 %v267_v6  ;;  %919 = vmatprep.subr.mxu0 %v148_v15  ;;  %v155_v56 = vld [vmem:[#allocation6 + $0x330] sm:$0xff]  ;;  %v154_v61 = vld [vmem:[#allocation6 + $0x328] sm:$0xff]  ;;  %v137_v62 = vld [vmem:[#allocation6 + $0x2a0] sm:$0xff] }
  0x40   :  { %954 = vmatprep.subr.mxu1 %v180_v16  ;;  %920 = vmatpush3.msra.mxu0 %v132_v17  ;;  %v169_v63 = vld [vmem:[#allocation6 + $0x3a0] sm:$0xff]  ;;  %v136_v3 = vld [vmem:[#allocation6 + $0x298] sm:$0xff]  ;;  %v135_v7 = vld [vmem:[#allocation6 + $0x290] sm:$0xff] }
  0x41   :  { %955 = vmatpush3.msra.mxu1 %v164_v18  ;;  %921 = vmatprep.subr.mxu0 %v147_v19  ;;  %v121_v1 = vld [vmem:[#allocation6 + $0x220] sm:$0xff]  ;;  %v168_v55 = vld [vmem:[#allocation6 + $0x398] sm:$0xff]  ;;  %v167_v8 = vld [vmem:[#allocation6 + $0x390] sm:$0xff]  ;;  %v285_v19 = vcombine.high %v277_v9, %v277_v9 }
  0x42   :  { %956 = vmatprep.subr.mxu1 %v179_v20  ;;  %922 = vmatpush3.msra.mxu0 %v131_v21  ;;  %v153_v2 = vld [vmem:[#allocation6 + $0x320] sm:$0xff]  ;;  %v120_v5 = vld [vmem:[#allocation6 + $0x218] sm:$0xff]  ;;  %v119_v10 = vld [vmem:[#allocation6 + $0x210] sm:$0xff] }
  0x43   :  { %957 = vmatpush3.msra.mxu1 %v163_v22  ;;  %923 = vmatprep.subr.mxu0 %v146_v23  ;;  %v152_v6 = vld [vmem:[#allocation6 + $0x318] sm:$0xff]  ;;  %v151_v11 = vld [vmem:[#allocation6 + $0x310] sm:$0xff]  ;;  %v134_v12 = vld [vmem:[#allocation6 + $0x288] sm:$0xff]  ;;  %v286_v22 = vcombine.high %v284_v14, %v284_v14 }
  0x44   :  { %958 = vmatprep.subr.mxu1 %v178_v24  ;;  %924 = vmatpush3.msra.mxu0 %v130_v25  ;;  %v166_v13 = vld [vmem:[#allocation6 + $0x388] sm:$0xff]  ;;  %v133_v17 = vld [vmem:[#allocation6 + $0x280] sm:$0xff]  ;;  %v212_v23 = vld [vmem:[#allocation6 + $0x4f8] sm:$0xff] }
  0x45   :  { %959 = vmatpush3.msra.mxu1 %v162_v26  ;;  %925 = vmatprep.subr.mxu0 %v145_v27  ;;  %v118_v15 = vld [vmem:[#allocation6 + $0x208] sm:$0xff]  ;;  %v165_v18 = vld [vmem:[#allocation6 + $0x380] sm:$0xff]  ;;  %v244_v24 = vld [vmem:[#allocation6 + $0x5f8] sm:$0xff] }
  0x46   :  { %960 = vmatprep.subr.mxu1 %v177_v28  ;;  %926 = vmatpush3.msra.mxu0 %v129_v29  ;;  %v150_v16 = vld [vmem:[#allocation6 + $0x308] sm:$0xff]  ;;  %v117_v20 = vld [vmem:[#allocation6 + $0x200] sm:$0xff]  ;;  %v196_v25 = vld [vmem:[#allocation6 + $0x478] sm:$0xff] }
  0x47   :  { %961 = vmatpush3.msra.mxu1 %v161_v30  ;;  %927 = vmatprep.subr.mxu0 %v144_v31  ;;  %v149_v21 = vld [vmem:[#allocation6 + $0x300] sm:$0xff]  ;;  %v228_v26 = vld [vmem:[#allocation6 + $0x578] sm:$0xff]  ;;  %v211_v27 = vld [vmem:[#allocation6 + $0x4f0] sm:$0xff] }
  0x48   :  { %962 = vmatprep.subr.mxu1 %v176_v32  ;;  %928 = vmatpush3.msra.mxu0 %v128_v33  ;;  %v243_v28 = vld [vmem:[#allocation6 + $0x5f0] sm:$0xff]  ;;  %v210_v31 = vld [vmem:[#allocation6 + $0x4e8] sm:$0xff]  ;;  %v204_v57 = vld [vmem:[#allocation6 + $0x4b8] sm:$0xff] }
  0x49   :  { %963 = vmatpush3.msra.mxu1 %v160_v34  ;;  %929 = vmatprep.subr.mxu0 %v143_v35  ;;  %v195_v29 = vld [vmem:[#allocation6 + $0x470] sm:$0xff]  ;;  %v242_v32 = vld [vmem:[#allocation6 + $0x5e8] sm:$0xff]  ;;  %v209_v35 = vld [vmem:[#allocation6 + $0x4e0] sm:$0xff] }
  0x4a   :  { %964 = vmatprep.subr.mxu1 %v175_v36  ;;  %930 = vmatpush3.msra.mxu0 %v127_v37  ;;  %v227_v30 = vld [vmem:[#allocation6 + $0x570] sm:$0xff]  ;;  %v194_v33 = vld [vmem:[#allocation6 + $0x468] sm:$0xff]  ;;  %v241_v36 = vld [vmem:[#allocation6 + $0x5e0] sm:$0xff] }
  0x4b   :  { %965 = vmatpush3.msra.mxu1 %v159_v38  ;;  %931 = vmatprep.subr.mxu0 %v142_v39  ;;  %v226_v34 = vld [vmem:[#allocation6 + $0x568] sm:$0xff]  ;;  %v193_v37 = vld [vmem:[#allocation6 + $0x460] sm:$0xff]  ;;  %v208_v39 = vld [vmem:[#allocation6 + $0x4d8] sm:$0xff] }
  0x4c   :  { %966 = vmatprep.subr.mxu1 %v174_v40  ;;  %932 = vmatpush3.msra.mxu0 %v126_v41  ;;  %v225_v38 = vld [vmem:[#allocation6 + $0x560] sm:$0xff]  ;;  %v240_v40 = vld [vmem:[#allocation6 + $0x5d8] sm:$0xff]  ;;  %v234_v4 = vld [vmem:[#allocation6 + $0x5a8] sm:$0xff] }
  0x4d   :  { %967 = vmatpush3.msra.mxu1 %v158_v42  ;;  %933 = vmatprep.subr.mxu0 %v141_v43  ;;  %v192_v41 = vld [vmem:[#allocation6 + $0x458] sm:$0xff]  ;;  %v207_v43 = vld [vmem:[#allocation6 + $0x4d0] sm:$0xff] }
  0x4e   :  { %968 = vmatprep.subr.mxu1 %v173_v44  ;;  %934 = vmatpush3.msra.mxu0 %v125_v45  ;;  %v224_v42 = vld [vmem:[#allocation6 + $0x558] sm:$0xff]  ;;  %v239_v44 = vld [vmem:[#allocation6 + $0x5d0] sm:$0xff] }
  0x4f   :  { %969 = vmatpush3.msra.mxu1 %v157_v46  ;;  %935 = vmatprep.subr.mxu0 %v140_v47  ;;  %v191_v45 = vld [vmem:[#allocation6 + $0x450] sm:$0xff]  ;;  %v206_v47 = vld [vmem:[#allocation6 + $0x4c8] sm:$0xff] }
  0x50   :  { %970 = vmatprep.subr.mxu1 %v172_v48  ;;  %936 = vmatpush3.msra.mxu0 %v124_v49  ;;  %v223_v46 = vld [vmem:[#allocation6 + $0x550] sm:$0xff]  ;;  %v238_v48 = vld [vmem:[#allocation6 + $0x5c8] sm:$0xff] }
  0x51   :  { %971 = vmatpush3.msra.mxu1 %v156_v50  ;;  %937 = vmatprep.subr.mxu0 %v139_v51  ;;  %v190_v49 = vld [vmem:[#allocation6 + $0x448] sm:$0xff]  ;;  %v205_v51 = vld [vmem:[#allocation6 + $0x4c0] sm:$0xff] }
  0x52   :  { %972 = vmatprep.subr.mxu1 %v171_v53  ;;  %938 = vmatpush3.msra.mxu0 %v123_v54  ;;  %v222_v50 = vld [vmem:[#allocation6 + $0x548] sm:$0xff]  ;;  %v237_v53 = vld [vmem:[#allocation6 + $0x5c0] sm:$0xff] }
  0x53   :  { %973 = vmatpush3.msra.mxu1 %v155_v56  ;;  %939 = vmatprep.subr.mxu0 %v138_v58  ;;  %v189_v54 = vld [vmem:[#allocation6 + $0x440] sm:$0xff]  ;;  %v236_v58 = vld [vmem:[#allocation6 + $0x5b8] sm:$0xff] }
  0x54   :  { %974 = vmatprep.subr.mxu1 %v170_v59  ;;  %940 = vmatpush3.msra.mxu0 %v122_v60  ;;  %v221_v56 = vld [vmem:[#allocation6 + $0x540] sm:$0xff]  ;;  %v1194_v59 = vld [vmem:[#allocation3 + $0x8] sm:$0x1f] }
  0x55   :  { %975 = vmatpush3.msra.mxu1 %v154_v61  ;;  %941 = vmatprep.subr.mxu0 %v137_v62  ;;  %v188_v60 = vld [vmem:[#allocation6 + $0x438] sm:$0xff]  ;;  %v203_v62 = vld [vmem:[#allocation6 + $0x4b0] sm:$0xff] }
  0x56   :  { %976 = vmatprep.subr.mxu1 %v169_v63  ;;  %942 = vmatpush3.msra.mxu0 %v121_v1  ;;  %v220_v61 = vld [vmem:[#allocation6 + $0x538] sm:$0xff]  ;;  %v235_v63 = vld [vmem:[#allocation6 + $0x5b0] sm:$0xff] }
  0x57   :  { %977 = vmatpush3.msra.mxu1 %v153_v2  ;;  %943 = vmatprep.subr.mxu0 %v136_v3  ;;  %v187_v1 = vld [vmem:[#allocation6 + $0x430] sm:$0xff]  ;;  %v51_v3 = vunpack.c.l.bf16 %v1194_v59 }
  0x58   :  { %978 = vmatprep.subr.mxu1 %v168_v55  ;;  %944 = vmatpush3.msra.mxu0 %v120_v5  ;;  %v219_v2 = vld [vmem:[#allocation6 + $0x530] sm:$0xff]  ;;  %v202_v55 = vld [vmem:[#allocation6 + $0x4a8] sm:$0xff] }
  0x59   :  { %979 = vmatpush3.msra.mxu1 %v152_v6  ;;  %945 = vmatprep.subr.mxu0 %v135_v7  ;;  %v186_v5 = vld [vmem:[#allocation6 + $0x428] sm:$0xff]  ;;  %v201_v7 = vld [vmem:[#allocation6 + $0x4a0] sm:$0xff] }
  0x5a   :  { %980 = vmatprep.subr.mxu1 %v167_v8  ;;  %946 = vmatpush3.msra.mxu0 %v119_v10  ;;  %v218_v6 = vld [vmem:[#allocation6 + $0x528] sm:$0xff]  ;;  %v233_v8 = vld [vmem:[#allocation6 + $0x5a0] sm:$0xff] }
  0x5b   :  { %981 = vmatpush3.msra.mxu1 %v151_v11  ;;  %947 = vmatprep.subr.mxu0 %v134_v12  ;;  %v217_v10 = vld [vmem:[#allocation6 + $0x520] sm:$0xff]  ;;  %v287_v11 = vcombine.high %v51_v3, %v51_v3  ;;  %v200_v12 = vld [vmem:[#allocation6 + $0x498] sm:$0xff] }
  0x5c   :  { %982 = vmatprep.subr.mxu1 %v166_v13  ;;  %948 = vmatpush3.msra.mxu0 %v118_v15  ;;  %v232_v13 = vld [vmem:[#allocation6 + $0x598] sm:$0xff] }
  0x5d   :  { %983 = vmatpush3.msra.mxu1 %v150_v16  ;;  %949 = vmatprep.subr.mxu0 %v133_v17  ;;  %v216_v15 = vld [vmem:[#allocation6 + $0x518] sm:$0xff]  ;;  %v199_v16 = vld [vmem:[#allocation6 + $0x490] sm:$0xff] }
  0x5e   :  { %984 = vmatprep.subr.mxu1 %v165_v18  ;;  %950 = vmatpush3.msra.mxu0 %v117_v20  ;;  %v231_v17 = vld [vmem:[#allocation6 + $0x590] sm:$0xff]  ;;  %v294_v18 = vrot.slane %v51_v3, %v1184_v52 }
  0x5f   :  { %530 = vmatprep.mubr.f32.mxu0 %v285_v19  ;;  %985 = vmatpush3.msra.mxu1 %v149_v21  ;;  %v183_v19 = vld [vmem:[#allocation6 + $0x410] sm:$0xff]  ;;  %v301_v21 = vrot.slane %v287_v11, %v1184_v52 }
  0x60   :  { %531 = vmatmul.mubr.f32.vlgmr.msra.gmra.mxu0 %v277_v9  ;;  %600 = vmatprep.mubr.f32.mxu1 %v286_v22  ;;  %v185_v9 = vld [vmem:[#allocation6 + $0x420] sm:$0xff]  ;;  %v215_v20 = vld [vmem:[#allocation6 + $0x510] sm:$0xff]  ;;  %v198_v22 = vld [vmem:[#allocation6 + $0x488] sm:$0xff] }
  0x61   :  { %989 = vmatprep.subr.mxu0 %v212_v23  ;;  %1024 = vmatprep.subr.mxu1 %v244_v24  ;;  %v230_v23 = vld [vmem:[#allocation6 + $0x588] sm:$0xff]  ;;  %v848_v3 = vld [vmem:[%s1214_s2] ss:$0 sm:$0xff] }
  0x62   :  { %601 = vmatmul.mubr.f32.vlgmr.msra.gmra.mxu1 %v284_v14  ;;  %990 = vmatpush3.msra.mxu0 %v196_v25  ;;  %v184_v14 = vld [vmem:[#allocation6 + $0x418] sm:$0xff]  ;;  %v182_v24 = vld [vmem:[#allocation6 + $0x408] sm:$0xff] }
  0x63   :  { %1025 = vmatpush3.msra.mxu1 %v228_v26  ;;  %991 = vmatprep.subr.mxu0 %v211_v27  ;;  %v214_v25 = vld [vmem:[#allocation6 + $0x508] sm:$0xff]  ;;  %v197_v26 = vld [vmem:[#allocation6 + $0x480] sm:$0xff] }
  0x64   :  { %1026 = vmatprep.subr.mxu1 %v243_v28  ;;  %992 = vmatpush3.msra.mxu0 %v195_v29  ;;  %v229_v27 = vld [vmem:[#allocation6 + $0x580] sm:$0xff]  ;;  %v302_v28 = vcombine.high %v294_v18, %v294_v18 }
  0x65   :  { %1027 = vmatpush3.msra.mxu1 %v227_v30  ;;  %993 = vmatprep.subr.mxu0 %v210_v31  ;;  %v181_v29 = vld [vmem:[#allocation6 + $0x400] sm:$0xff]  ;;  %v303_v30 = vcombine.high %v301_v21, %v301_v21 }
  0x66   :  { %1028 = vmatprep.subr.mxu1 %v242_v32  ;;  %994 = vmatpush3.msra.mxu0 %v194_v33  ;;  %v213_v31 = vld [vmem:[#allocation6 + $0x500] sm:$0xff]  ;;  %v248_v32 = vld [vmem:[#allocation6 + $0x618] sm:$0xff]  ;;  %v52_v33 = vunpack.c.h.bf16 %v1194_v59 }
  0x67   :  { %1029 = vmatpush3.msra.mxu1 %v226_v34  ;;  %995 = vmatprep.subr.mxu0 %v209_v35  ;;  %v247_v34 = vld [vmem:[#allocation6 + $0x610] sm:$0xff]  ;;  %v246_v35 = vld [vmem:[#allocation6 + $0x608] sm:$0xff] }
  0x68   :  { %1030 = vmatprep.subr.mxu1 %v241_v36  ;;  %996 = vmatpush3.msra.mxu0 %v193_v37  ;;  %v245_v36 = vld [vmem:[#allocation6 + $0x600] sm:$0xff]  ;;  %v310_v37 = vrot.slane %v52_v33, %v1184_v52 }
  0x69   :  { %1031 = vmatpush3.msra.mxu1 %v225_v38  ;;  %997 = vmatprep.subr.mxu0 %v208_v39 }
  0x6a   :  { %1032 = vmatprep.subr.mxu1 %v240_v40  ;;  %998 = vmatpush3.msra.mxu0 %v192_v41 }
  0x6b   :  { %1033 = vmatpush3.msra.mxu1 %v224_v42  ;;  %999 = vmatprep.subr.mxu0 %v207_v43 }
  0x6c   :  { %1034 = vmatprep.subr.mxu1 %v239_v44  ;;  %1000 = vmatpush3.msra.mxu0 %v191_v45 }
  0x6d   :  { %1035 = vmatpush3.msra.mxu1 %v223_v46  ;;  %1001 = vmatprep.subr.mxu0 %v206_v47 }
  0x6e   :  { %1036 = vmatprep.subr.mxu1 %v238_v48  ;;  %1002 = vmatpush3.msra.mxu0 %v190_v49 }
  0x6f   :  { %1037 = vmatpush3.msra.mxu1 %v222_v50  ;;  %1003 = vmatprep.subr.mxu0 %v205_v51 }
  0x70   :  { %1038 = vmatprep.subr.mxu1 %v237_v53  ;;  %1004 = vmatpush3.msra.mxu0 %v189_v54 }
  0x71   :  { %1039 = vmatpush3.msra.mxu1 %v221_v56  ;;  %1005 = vmatprep.subr.mxu0 %v204_v57 }
  0x72   :  { %1040 = vmatprep.subr.mxu1 %v236_v58  ;;  %1006 = vmatpush3.msra.mxu0 %v188_v60 }
  0x73   :  { %1041 = vmatpush3.msra.mxu1 %v220_v61  ;;  %1007 = vmatprep.subr.mxu0 %v203_v62  ;;  %v46_v61 = vld [vmem:[#allocation2] sm:$0x3] }
  0x74   :  { %1042 = vmatprep.subr.mxu1 %v235_v63  ;;  %1008 = vmatpush3.msra.mxu0 %v187_v1 }
  0x75   :  { %1043 = vmatpush3.msra.mxu1 %v219_v2  ;;  %1009 = vmatprep.subr.mxu0 %v202_v55 }
  0x76   :  { %1044 = vmatprep.subr.mxu1 %v234_v4  ;;  %1010 = vmatpush3.msra.mxu0 %v186_v5 }
  0x77   :  { %1045 = vmatpush3.msra.mxu1 %v218_v6  ;;  %1011 = vmatprep.subr.mxu0 %v201_v7 }
  0x78   :  { %1046 = vmatprep.subr.mxu1 %v233_v8  ;;  %1012 = vmatpush3.msra.mxu0 %v185_v9 }
  0x79   :  { %1047 = vmatpush3.msra.mxu1 %v217_v10  ;;  %1013 = vmatprep.subr.mxu0 %v200_v12 }
  0x7a   :  { %1048 = vmatprep.subr.mxu1 %v232_v13  ;;  %1014 = vmatpush3.msra.mxu0 %v184_v14 }
  0x7b   :  { %1049 = vmatpush3.msra.mxu1 %v216_v15  ;;  %1015 = vmatprep.subr.mxu0 %v199_v16 }
  0x7c   :  { %1050 = vmatprep.subr.mxu1 %v231_v17  ;;  %1016 = vmatpush3.msra.mxu0 %v183_v19 }
  0x7d   :  { %1051 = vmatpush3.msra.mxu1 %v215_v20  ;;  %1017 = vmatprep.subr.mxu0 %v198_v22 }
  0x7e   :  { %1052 = vmatprep.subr.mxu1 %v230_v23  ;;  %1018 = vmatpush3.msra.mxu0 %v182_v24 }
  0x7f   :  { %1053 = vmatpush3.msra.mxu1 %v214_v25  ;;  %1019 = vmatprep.subr.mxu0 %v197_v26 }
  0x80   :  { %1054 = vmatprep.subr.mxu1 %v229_v27  ;;  %1020 = vmatpush3.msra.mxu0 %v181_v29 }
  0x81   :  { %670 = vmatprep.mubr.f32.mxu0 %v302_v28  ;;  %1055 = vmatpush3.msra.mxu1 %v213_v31 }
  0x82   :  { %740 = vmatprep.mubr.f32.mxu1 %v303_v30  ;;  %671 = vmatmul.mubr.f32.vlgmr.msra.gmra.mxu0 %v294_v18 }
  0x83   :  { %741 = vmatmul.mubr.f32.vlgmr.msra.gmra.mxu1 %v301_v21  ;;  %1064 = vmatprep.subr.mxu0 %v1153_v0 }
  0x84   :  { %1072 = vmatprep.mubr.msk.f32.mxu0 %vm1155_vm0, %v1153_v0  ;;  %1065 = vmatpush3.msra.mxu0 %v248_v32 }
  0x85   :  { %1066 = vmatprep.subr.mxu0 %v1153_v0 }
  0x86   :  { %1067 = vmatpush3.msra.mxu0 %v247_v34 }
  0x87   :  { %1068 = vmatprep.subr.mxu0 %v1153_v0 }
  0x88   :  { %1069 = vmatpush3.msra.mxu0 %v246_v35 }
  0x89   :  { %1070 = vmatprep.subr.mxu0 %v1153_v0 }
  0x8a   :  { %1071 = vmatpush3.msra.mxu0 %v245_v36 }
  0x8b   :  { %1073 = vmatmul.mubr.msk.f32.vlgmr.msra.gmra.mxu0 %vm323_vm1, %v310_v37 }
  0xfe   :  { %v881_v38 = vpop.f32.mrf.mxu0 }
  0xff   :  { %v916_v39 = vpop.f32.mrf.mxu1 }
 0x100   :  { %v882_v40 = vpop.f32.mrf.mxu0 }
 0x101   :  { %v917_v42 = vpop.f32.mrf.mxu1  ;;  %v883_v45 = vadd.f32 %v882_v40, %v881_v38 }
 0x102   :  { %v918_v46 = vadd.f32 %v917_v42, %v916_v39 }
 0x104   :  { %v463_v49 = vadd.f32 %v918_v46, %v883_v45 }
 0x120   :  { %v951_v41 = vpop.f32.mrf.mxu0 }
 0x122   :  { %v986_v43 = vpop.f32.mrf.mxu1  ;;  %v952_v44 = vpop.f32.mrf.mxu0 }
 0x123   :  { %v953_v47 = vadd.f32 %v952_v44, %v951_v41 }
 0x124   :  { %v987_v48 = vpop.f32.mrf.mxu1 }
 0x125   :  { %v533_v50 = vadd.f32 %v953_v47, %v463_v49  ;;  %v988_v52 = vadd.f32 %v987_v48, %v986_v43 }
 0x127   :  { %v603_v56 = vadd.f32 %v988_v52, %v533_v50 }
 0x142   :  { %v1021_v51 = vpop.f32.mrf.mxu0 }
 0x143   :  { %v1056_v53 = vpop.f32.mrf.mxu1 }
 0x144   :  { %v1022_v54 = vpop.f32.mrf.mxu0 }
 0x145   :  { %v1057_v0 = vpop.f32.mrf.mxu1  ;;  %v1023_v57 = vadd.f32 %v1022_v54, %v1021_v51 }
 0x146   :  { %v1058_v59 = vadd.f32 %v1057_v0, %v1056_v53 }
 0x147   :  { %v673_v58 = vadd.f32 %v1023_v57, %v603_v56 }
 0x149   :  { %v743_v60 = vadd.f32 %v1058_v59, %v673_v58 }
 0x14b   :  { %v812_v62 = vpop.f32.mrf.mxu0 }
 0x14c   :  { %v813_v63 = vadd.f32 %v812_v62, %v743_v60 }
 0x14d   :  { %v1074_v1 = vpop.f32.mrf.mxu0 }
 0x14e   :  { %v816_v2 = vadd.f32 %v813_v63, %v46_v61 }
 0x150   :  { %817 = vst [vmem:[#allocation2] sm:$0x3] %v816_v2 }
 0x157   :  { %v821_v55 = vld [vmem:[#allocation2] sm:$0x3] }
 0x158   :  { %v829_v4 = vadd.f32 %v848_v3, %v821_v55 }
 0x15a   :  { %830 = vst [vmem:[#allocation8] sm:$0x3] %v829_v4 }
 0x15b   :  { %1134 = shalt.err (!%p1131_p0)
}
 0x15c   :  { %840 = dma.vmem_to_hbm [thread:$0]  %s838_s26, 32, %s1215_s3, [#allocation5]  }
 0x15d   :  { %1147 = dma.done.wait [#allocation5], 32  }
 0x15e   :  { %1148 = vsyncadd [#allocation5], 4294967264 }
 0x15f   :  { %844 = vsyncpa [#allocation4], 1 }
 0x160   :  { %845 = vsyncpa [#allocation7], 1 }
 0x161   :  { %846 = vsyncpa [#allocation5], 1 }

</bundles_post_ra>
